<compile_context>
chip_gen: v7x
topology: tpu7x:2x2x1
jax: 0.10.0
libtpu: 0.0.40
codegen_flags: <defaults>
</compile_context>

<pallas_src>
import jax
import jax.numpy as jnp
from jax.experimental import pallas as pl
from jax.experimental.pallas import tpu as pltpu


def _round_up(x, m):
    return ((x + m - 1) // m) * m


def glove_fwd_kernel(lids_ref, rids_ref, ltT_ref, rtT_ref, o_ref):
    """One grid step == TB (left, right) token pairs, no per-pair loop.

    lids_ref / rids_ref : int32 (1, TB)  lane-dense token-id blocks (VMEM)
    ltT_ref / rtT_ref   : f32  (Dp, Vp)  transposed, bias-augmented tables (VMEM-resident)
    o_ref               : f32  (1, TB)   lane-dense output block
    """
    vp = ltT_ref.shape[1]
    tb = o_ref.shape[1]

    # One-hot selection matrices, built with a single tile-wide compare.
    vocab_iota = jax.lax.broadcasted_iota(jnp.int32, (vp, tb), 0)          # (Vp, TB)
    onehot_l = (vocab_iota == lids_ref[...]).astype(ltT_ref.dtype)         # (Vp, TB)
    onehot_r = (vocab_iota == rids_ref[...]).astype(rtT_ref.dtype)

    # Row gather on the MXU: (Dp, Vp) @ (Vp, TB) -> (Dp, TB) of gathered columns.
    lg = jnp.dot(ltT_ref[...], onehot_l, preferred_element_type=jnp.float32)
    rg = jnp.dot(rtT_ref[...], onehot_r, preferred_element_type=jnp.float32)

    # Augmented rows carry the biases, so one sublane reduce gives the full score,
    # already lane-major -> single unmasked lane-dense store.
    o_ref[...] = jnp.sum(lg * rg, axis=0, keepdims=True)                   # (1, TB)


def build_glove_tables(l_emb, l_bias, r_emb, r_bias, table_dtype=jnp.float32):
    """Build the transposed, bias-augmented tables once (hoisted out of forward).

    Returns ltT, rtT of shape (Dp, Vp) with
      ltT[:, v] = [l_emb[v], l_bias[v], 1, 0...],   rtT[:, v] = [r_emb[v], 1, r_bias[v], 0...]
    so that  ltT[:, l] . rtT[:, r] == (l_emb[l]*r_emb[r]).sum() + l_bias[l] + r_bias[r].
    """
    V, D = l_emb.shape
    ones = jnp.ones((V, 1), jnp.float32)
    lt = jnp.concatenate(
        [l_emb.astype(jnp.float32), l_bias.reshape(V, 1).astype(jnp.float32), ones], axis=1)
    rt = jnp.concatenate(
        [r_emb.astype(jnp.float32), ones, r_bias.reshape(V, 1).astype(jnp.float32)], axis=1)

    d_aug = D + 2
    dp = _round_up(d_aug, 8)          # sublane-aligned augmented-embedding axis
    vp = _round_up(V, 8)              # modest vocab padding only (no 128-lane inflation)

    ltT = jnp.zeros((dp, vp), table_dtype).at[:d_aug, :V].set(lt.T.astype(table_dtype))
    rtT = jnp.zeros((dp, vp), table_dtype).at[:d_aug, :V].set(rt.T.astype(table_dtype))
    return ltT, rtT


def glove_forward(left, right, ltT, rtT, *, tile_b=512):
    """Pallas equivalent of Glove.forward for 1-D index inputs.

    left, right : int [B] token indices
    ltT, rtT    : (Dp, Vp) transposed augmented tables from build_glove_tables
    returns     : f32 [B] scores
    """
    assert tile_b % 128 == 0, "tile_b must be a multiple of the 128-lane vreg width"
    dp, vp = ltT.shape
    B = left.shape[0]
    itemsize = jnp.dtype(ltT.dtype).itemsize

    # ---- generation-aware VMEM budget (v5e/v6e ~128 MiB, v7x 64 MiB) ---------------
    try:
        vmem_cap = int(pltpu.get_tpu_info().vmem_capacity_bytes)
    except Exception:
        vmem_cap = 64 * 1024 * 1024       # conservative fallback (v7x-sized)
    vmem_budget = (vmem_cap * 3) // 4

    table_bytes = 2 * dp * vp * itemsize  # both resident tables (single count)

    def working_bytes(tb):
        onehot = 2 * vp * tb * 4          # two in-kernel one-hot temporaries
        gathered = 2 * dp * tb * 4        # two gathered-row temporaries
        io = 2 * (2 * tb * 4) + 2 * (tb * 4)   # double-buffered idx blocks + out block
        # x2 on tables: the pipeline may still double-buffer the constant-index blocks.
        return 2 * table_bytes + onehot + gathered + io + (2 << 20)

    # ---- pick the per-step batch tile ---------------------------------------------
    TB = tile_b
    while TB > 128 and pl.cdiv(B, TB) < 2:      # >=2 grid steps when possible (v7x megacore)
        TB -= 128
    while TB > 128 and working_bytes(TB) > vmem_budget:
        TB -= 128
    if working_bytes(TB) > vmem_budget:
        # TODO(synk): manual double-buffered DMA row gather for very large vocabularies.
        raise NotImplementedError(
            "embedding tables / one-hot working set too large for resident-VMEM kernel")

    G = pl.cdiv(B, TB)
    B_pad = G * TB

    left_p = jnp.zeros((B_pad,), jnp.int32).at[:B].set(left.astype(jnp.int32)).reshape(G, TB)
    right_p = jnp.zeros((B_pad,), jnp.int32).at[:B].set(right.astype(jnp.int32)).reshape(G, TB)

    grid_spec = pltpu.PrefetchScalarGridSpec(
        num_scalar_prefetch=0,
        grid=(G,),
        in_specs=[
            pl.BlockSpec((1, TB), lambda i: (i, 0)),        # left ids (lane-dense)
            pl.BlockSpec((1, TB), lambda i: (i, 0)),        # right ids (lane-dense)
            # Full-array blocks + constant index_map => tables stay resident in VMEM
            # (one HBM->VMEM copy total, no per-pair HBM traffic).
            pl.BlockSpec((dp, vp), lambda i: (0, 0)),
            pl.BlockSpec((dp, vp), lambda i: (0, 0)),
        ],
        out_specs=pl.BlockSpec((1, TB), lambda i: (i, 0)),
    )

    out = pl.pallas_call(
        glove_fwd_kernel,
        grid_spec=grid_spec,
        out_shape=jax.ShapeDtypeStruct((G, TB), jnp.float32),
        compiler_params=pltpu.CompilerParams(
            dimension_semantics=("parallel",),              # batch tiles shard across TCs
            vmem_limit_bytes=int(vmem_budget),
        ),
    )(left_p, right_p, ltT, rtT)

    return out.reshape(B_pad)[:B]


def init_glove_params(key, vocab_size, d_embed, pad_id):
    """Deterministic nn.Embedding-style init: N(0,1), padding row zeroed."""
    k1, k2, k3, k4 = jax.random.split(key, 4)
    l_emb = jax.random.normal(k1, (vocab_size, d_embed), jnp.float32)
    r_emb = jax.random.normal(k2, (vocab_size, d_embed), jnp.float32)
    l_bias = jax.random.normal(k3, (vocab_size, 1), jnp.float32)
    r_bias = jax.random.normal(k4, (vocab_size, 1), jnp.float32)
    l_emb = l_emb.at[pad_id].set(0.0)
    r_emb = r_emb.at[pad_id].set(0.0)
    l_bias = l_bias.at[pad_id].set(0.0)
    r_bias = r_bias.at[pad_id].set(0.0)
    return l_emb, l_bias, r_emb, r_bias


if __name__ == "__main__":
    key = jax.random.PRNGKey(0)
    k_param, k_left, k_right = jax.random.split(key, 3)

    vocab_size = 64      # vocab_sizes['total']
    d_embed = 32
    pad_id = 0           # special_tokens['[PAD]']
    batch = 8

    l_emb, l_bias, r_emb, r_bias = init_glove_params(k_param, vocab_size, d_embed, pad_id)

    # Table construction hoisted out of the per-call forward (done once per model).
    ltT, rtT = build_glove_tables(l_emb, l_bias, r_emb, r_bias)

    left = jax.random.randint(k_left, (batch,), 0, vocab_size, dtype=jnp.int32)
    right = jax.random.randint(k_right, (batch,), 0, vocab_size, dtype=jnp.int32)

    out = glove_forward(left, right, ltT, rtT)
    out = jax.block_until_ready(out)

    # Pure-JAX reference of the PyTorch forward semantics.
    ref = (l_emb[left] * r_emb[right]).sum(axis=-1) + l_bias[left, 0] + r_bias[right, 0]
    assert out.shape == (batch,)
    assert jnp.allclose(out, ref, atol=1e-3, rtol=1e-3), (out, ref)

    print("KERNEL_OK")
</pallas_src>

<mosaic_0001>
module attributes {stable_mosaic.version = 11 : i64} {
  func.func @glove_fwd_kernel(%arg0: i32, %arg1: memref<1x128xi32, #tpu.memory_space<vmem>>, %arg2: memref<1x128xi32, #tpu.memory_space<vmem>>, %arg3: memref<40x64xf32, #tpu.memory_space<vmem>>, %arg4: memref<40x64xf32, #tpu.memory_space<vmem>>, %arg5: memref<1x128xf32, #tpu.memory_space<vmem>>) attributes {dimension_semantics = [#tpu.dimension_semantics<parallel>], iteration_bounds = array<i64: 1>, scalar_prefetch = 0 : i64, scratch_operands = 0 : i64, tpu.core_type = #tpu.core_type<tc>, window_params = [{transform_indices = @transform_0, window_bounds = array<i64: 1, 128>}, {transform_indices = @transform_1, window_bounds = array<i64: 1, 128>}, {pipeline_mode = #tpu.pipeline_mode<synchronous>, transform_indices = @transform_2, window_bounds = array<i64: 40, 64>}, {pipeline_mode = #tpu.pipeline_mode<synchronous>, transform_indices = @transform_3, window_bounds = array<i64: 40, 64>}, {transform_indices = @transform_4, window_bounds = array<i64: 1, 128>}]} {
    %0 = tpu.iota {dimensions = array<i32: 0>} : vector<64x128xi32>
    %c0 = arith.constant 0 : index
    %c0_0 = arith.constant 0 : index
    %1 = vector.load %arg1[%c0, %c0_0] : memref<1x128xi32, #tpu.memory_space<vmem>>, vector<1x128xi32>
    %2 = vector.broadcast %1 : vector<1x128xi32> to vector<64x128xi32>
    %3 = arith.cmpi eq, %0, %2 : vector<64x128xi32>
    %4 = arith.extui %3 : vector<64x128xi1> to vector<64x128xi32>
    %5 = arith.sitofp %4 : vector<64x128xi32> to vector<64x128xf32>
    %c0_1 = arith.constant 0 : index
    %c0_2 = arith.constant 0 : index
    %6 = vector.load %arg2[%c0_1, %c0_2] : memref<1x128xi32, #tpu.memory_space<vmem>>, vector<1x128xi32>
    %7 = vector.broadcast %6 : vector<1x128xi32> to vector<64x128xi32>
    %8 = arith.cmpi eq, %0, %7 : vector<64x128xi32>
    %9 = arith.extui %8 : vector<64x128xi1> to vector<64x128xi32>
    %10 = arith.sitofp %9 : vector<64x128xi32> to vector<64x128xf32>
    %c0_3 = arith.constant 0 : index
    %c0_4 = arith.constant 0 : index
    %11 = vector.load %arg3[%c0_3, %c0_4] : memref<40x64xf32, #tpu.memory_space<vmem>>, vector<40x64xf32>
    %cst = arith.constant dense<0.000000e+00> : vector<40x128xf32>
    %12 = tpu.matmul %11, %5, %cst {dimension_numbers = #tpu.dot_dimension_numbers<[1], [0], [0], [1], [0, 0, 1, 1], [], []>} : vector<40x64xf32>, vector<64x128xf32>, vector<40x128xf32> -> vector<40x128xf32>
    %c0_5 = arith.constant 0 : index
    %c0_6 = arith.constant 0 : index
    %13 = vector.load %arg4[%c0_5, %c0_6] : memref<40x64xf32, #tpu.memory_space<vmem>>, vector<40x64xf32>
    %cst_7 = arith.constant dense<0.000000e+00> : vector<40x128xf32>
    %14 = tpu.matmul %13, %10, %cst_7 {dimension_numbers = #tpu.dot_dimension_numbers<[1], [0], [0], [1], [0, 0, 1, 1], [], []>} : vector<40x64xf32>, vector<64x128xf32>, vector<40x128xf32> -> vector<40x128xf32>
    %15 = arith.mulf %12, %14 : vector<40x128xf32>
    %cst_8 = arith.constant dense<0.000000e+00> : vector<128xf32>
    %16 = vector.multi_reduction <add>, %15, %cst_8 [0] : vector<40x128xf32> to vector<128xf32>
    %17 = vector.shape_cast %16 : vector<128xf32> to vector<1x128xf32>
    %c0_9 = arith.constant 0 : index
    %c0_10 = arith.constant 0 : index
    %18 = vector.load %arg5[%c0_9, %c0_10] : memref<1x128xf32, #tpu.memory_space<vmem>>, vector<1x128xf32>
    tpu.vector_store %arg5[%c0_9, %c0_10], %17 {strides = array<i32>} : memref<1x128xf32, #tpu.memory_space<vmem>>, vector<1x128xf32>,
    return
  }
  func.func @transform_0(%arg0: i32) -> (i32, i32) {
    %c0_i32 = arith.constant 0 : i32
    %c0_i32_0 = arith.constant 0 : i32
    return %arg0, %c0_i32 : i32, i32
  }
  func.func @transform_1(%arg0: i32) -> (i32, i32) {
    %c0_i32 = arith.constant 0 : i32
    %c0_i32_0 = arith.constant 0 : i32
    return %arg0, %c0_i32 : i32, i32
  }
  func.func @transform_2(%arg0: i32) -> (i32, i32) {
    %c0_i32 = arith.constant 0 : i32
    %c0_i32_0 = arith.constant 0 : i32
    %c0_i32_1 = arith.constant 0 : i32
    return %c0_i32, %c0_i32_0 : i32, i32
  }
  func.func @transform_3(%arg0: i32) -> (i32, i32) {
    %c0_i32 = arith.constant 0 : i32
    %c0_i32_0 = arith.constant 0 : i32
    %c0_i32_1 = arith.constant 0 : i32
    return %c0_i32, %c0_i32_0 : i32, i32
  }
  func.func @transform_4(%arg0: i32) -> (i32, i32) {
    %c0_i32 = arith.constant 0 : i32
    %c0_i32_0 = arith.constant 0 : i32
    return %arg0, %c0_i32 : i32, i32
  }
}

</mosaic_0001>

<bundles_post_ra>
// kernel: tpu_custom_call.1
= control target key start
LH: loop header
LB: loop body
LE: loop exit
PB: predicated region body
PF: predicated region fallthrough
CT: control target
= control target key end

     0   :  { %9 = vsyncpa [#allocation3], 0  ;;  %s759_s0 = inlined_call_operand.hbm [shape: s32[1,128], index: 0, kind: input, shape index: {}]   ;;  %s760_s1 = inlined_call_operand.vmem [shape: s32[1,128], index: 1, kind: input, shape index: {}]   ;;  %s761_s2 = inlined_call_operand.hbm [shape: f32[40,64], index: 2, kind: input, shape index: {}]   ;;  %s762_s3 = inlined_call_operand.hbm [shape: f32[40,64], index: 3, kind: input, shape index: {}]   ;;  %s763_s4 = inlined_call_operand.hbm [shape: f32[1,128], index: 4, kind: output, shape index: {}]  }
   0x1   :  { %10 = vsyncpa [#allocation6], 0 }
   0x2   :  { %11 = vsyncpa [#allocation4], 0  ;;  %s637_s15 = smov [#allocation5]   ;;  %s543_s19 = scalar_lea.hbm %s761_s2, 640 }
   0x3   :  { %s29_s16 = sshll.u32 %s637_s15, 4  ;;  %p544_p0 = scmp.ne.s32.totalorder %s761_s2, %s543_s19  ;;  %s30_s16 = int_to_ptr.vmem [resolvable:$true] %s29_s16 }
   0x4   :  { %p547_p1 = scmp.lt.u32.totalorder %s543_s19, %s761_s2 }
   0x6   :  { %p549_p2 = pnand %p547_p1, %p544_p0 }
   0x8   :  { %552 = shalt.err (!%p549_p2)
}
   0x9   :  { %s553_s24 = scalar_lea.vmem %s30_s16, 640  ;;  %p558_p4 = scmp.lt.s32.totalorder %s30_s16, %s30_s16 }
   0xa   :  { %p554_p3 = scmp.ne.s32.totalorder %s30_s16, %s553_s24  ;;  %p559_p5 = scmp.lt.s32.totalorder %s553_s24, %s553_s24 }
   0xc   :  { %p560_p6 = por %p559_p5, %p558_p4 }
   0xe   :  { %p561_p7 = pnand %p560_p6, %p554_p3 }
  0x10   :  { %564 = shalt.err (!%p561_p7)
}
  0x11   :  { %s638_s25 = smov 128   ;;  %s639_s26 = smov 8  }
  0x12   :  { %35 = dma.hbm_to_vmem [thread:$0]  %s761_s2, 640, %s30_s16, [#allocation6], %s638_s25, %s638_s25, %s639_s26  }
  0x13   :  { %s640_s29 = smov [#allocation2]   ;;  %s641_s5 = smov [#allocation7]  }
  0x14   :  { %s18_s30 = sshll.u32 %s640_s29, 4  ;;  %s41_s6 = sshll.u32 %s641_s5, 4  ;;  %s19_s30 = int_to_ptr.vmem [resolvable:$true] %s18_s30  ;;  %s42_s6 = int_to_ptr.vmem [resolvable:$true] %s41_s6 }
  0x15   :  { %s565_s9 = scalar_lea.hbm %s759_s0, 16 }
  0x16   :  { %p566_p8 = scmp.ne.s32.totalorder %s759_s0, %s565_s9  ;;  %p569_p9 = scmp.lt.u32.totalorder %s565_s9, %s759_s0 }
  0x18   :  { %p571_p10 = pnand %p569_p9, %p566_p8 }
  0x1a   :  { %574 = shalt.err (!%p571_p10)
}
  0x1b   :  { %s575_s2 = scalar_lea.vmem %s19_s30, 16  ;;  %s579_s14 = scalar_lea.vmem %s19_s30, 32 }
  0x1c   :  { %p576_p11 = scmp.ne.s32.totalorder %s19_s30, %s575_s2  ;;  %p580_p12 = scmp.lt.s32.totalorder %s19_s30, %s19_s30 }
  0x1d   :  { %p581_p13 = scmp.lt.s32.totalorder %s579_s14, %s575_s2 }
  0x1f   :  { %p582_p0 = por %p581_p13, %p580_p12 }
  0x21   :  { %p583_p1 = pnand %p582_p0, %p576_p11 }
  0x23   :  { %586 = shalt.err (!%p583_p1)
}
  0x24   :  { %21 = dma.hbm_to_vmem [thread:$0]  %s759_s0, 16, %s19_s30, [#allocation3]  }
  0x25   :  { %s587_s19 = scalar_lea.hbm %s762_s3, 640 }
  0x26   :  { %p588_p2 = scmp.ne.s32.totalorder %s762_s3, %s587_s19  ;;  %p591_p3 = scmp.lt.u32.totalorder %s587_s19, %s762_s3 }
  0x28   :  { %p593_p4 = pnand %p591_p3, %p588_p2 }
  0x2a   :  { %596 = shalt.err (!%p593_p4)
}
  0x2b   :  { %s597_s24 = scalar_lea.vmem %s42_s6, 640  ;;  %p602_p6 = scmp.lt.s32.totalorder %s42_s6, %s42_s6 }
  0x2c   :  { %p598_p5 = scmp.ne.s32.totalorder %s42_s6, %s597_s24  ;;  %p603_p7 = scmp.lt.s32.totalorder %s597_s24, %s597_s24 }
  0x2e   :  { %p604_p8 = por %p603_p7, %p602_p6 }
  0x30   :  { %p605_p9 = pnand %p604_p8, %p598_p5 }
  0x32   :  { %608 = shalt.err (!%p605_p9)
}
  0x33   :  { %47 = dma.hbm_to_vmem [thread:$0]  %s762_s3, 640, %s42_s6, [#allocation6], %s638_s25, %s638_s25, %s639_s26  }
  0x34   :  { %631 = dma.done.wait [#allocation3], 16  }
  0x35   :  { %632 = vsyncadd [#allocation3], 4294967280 }
  0x36   :  { %633 = dma.done.wait [#allocation6], 1280  }
  0x37   :  { %634 = vsyncadd [#allocation6], 4294966016  ;;  %v57_v0 = vlaneseq  ;;  %v642_v1 = vmov 0.0|0.0   ;;  %vm764_vm0 = vmmov 0   ;;  %v644_v3 = vmov 0.0   ;;  %v124_v14 = vld [vmem:[#allocation5] sm:$0xff] }
  0x38   :  { %509 = vmatprep.subr.bf16.mxu0 %v642_v1  ;;  %521 = vmatprep.subr.bf16.mxu1 %v642_v1  ;;  %v377_v7 = vld [vmem:[#allocation2] ss:$0 sm:$0xff]  ;;  %v645_v11 = vmov 1.0|1.0   ;;  %v235_v15 = vld [vmem:[#allocation7] sm:$0xff]  ;;  %v236_v17 = vld [vmem:[#allocation7 + $0x8] sm:$0xff] }
  0x39   :  { %v58_v2 = vshrl.u32 %v57_v0, 7  ;;  %463 = vmatprep.mubr.msk.f32.mxu0 %vm764_vm0, %v644_v3  ;;  %494 = vmatprep.mubr.msk.f32.mxu1 %vm764_vm0, %v644_v3  ;;  %v386_v8 = vld [vmem:[%s760_s1] ss:$0 sm:$0xff]  ;;  %v125_v16 = vld [vmem:[#allocation5 + $0x8] sm:$0xff]  ;;  %v126_v18 = vld [vmem:[#allocation5 + $0x10] sm:$0xff]  ;;  %s646_s1 = smov [#allocation8]  }
  0x3a   :  { %v237_v19 = vld [vmem:[#allocation7 + $0x10] sm:$0xff]  ;;  %v238_v21 = vld [vmem:[#allocation7 + $0x18] sm:$0xff]  ;;  %v239_v23 = vld [vmem:[#allocation7 + $0x20] sm:$0xff]  ;;  %s367_s26 = sshll.u32 %s646_s1, 4  ;;  %s368_s26 = int_to_ptr.vmem [resolvable:$true] %s367_s26 }
  0x3b   :  { %v59_v4 = vadd.s32 8, %v58_v2  ;;  %v60_v5 = vadd.s32 16, %v58_v2  ;;  %v61_v6 = vadd.s32 24, %v58_v2  ;;  %v62_v9 = vadd.s32 32, %v58_v2  ;;  %v127_v20 = vld [vmem:[#allocation5 + $0x18] sm:$0xff]  ;;  %v128_v22 = vld [vmem:[#allocation5 + $0x20] sm:$0xff]  ;;  %p614_p11 = scmp.lt.s32.totalorder %s368_s26, %s368_s26 }
  0x3c   :  { %v63_v10 = vadd.s32 40, %v58_v2  ;;  %vm71_vm1 = vcmp.eq.s32.totalorder %v58_v2, %v377_v7  ;;  %vm100_vm3 = vcmp.eq.s32.totalorder %v58_v2, %v386_v8  ;;  %v64_v12 = vadd.s32 48, %v58_v2  ;;  %s609_s28 = scalar_lea.vmem %s368_s26, 16  ;;  %s613_s29 = scalar_lea.vmem %s368_s26, 32 }
  0x3d   :  { %vm72_vm2 = vcmp.eq.s32.totalorder %v59_v4, %v377_v7  ;;  %vm101_vm4 = vcmp.eq.s32.totalorder %v59_v4, %v386_v8  ;;  %vm73_vm6 = vcmp.eq.s32.totalorder %v60_v5, %v377_v7  ;;  %vm74_vm7 = vcmp.eq.s32.totalorder %v61_v6, %v377_v7  ;;  %p610_p10 = scmp.ne.s32.totalorder %s368_s26, %s609_s28  ;;  %p615_p12 = scmp.lt.s32.totalorder %s613_s29, %s609_s28 }
  0x3e   :  { %vm510_vm5 = vmpackc.low %vm72_vm2, %vm71_vm1  ;;  %vm102_vm8 = vcmp.eq.s32.totalorder %v60_v5, %v386_v8  ;;  %vm103_vm9 = vcmp.eq.s32.totalorder %v61_v6, %v386_v8  ;;  %vm75_vm13 = vcmp.eq.s32.totalorder %v62_v9, %v377_v7  ;;  %vm76_vm14 = vcmp.eq.s32.totalorder %v63_v10, %v377_v7 }
  0x3f   :  { %511 = vmatpush3.bf16.msk.msra.mxu0 %vm510_vm5, %v645_v11  ;;  %vm522_vm10 = vmpackc.low %vm101_vm4, %vm100_vm3  ;;  %v65_v13 = vadd.s32 56, %v58_v2  ;;  %vm104_vm15 = vcmp.eq.s32.totalorder %v62_v9, %v386_v8  ;;  %vm105_vm0 = vcmp.eq.s32.totalorder %v63_v10, %v386_v8  ;;  %vm77_vm5 = vcmp.eq.s32.totalorder %v64_v12, %v377_v7  ;;  %p616_p13 = por %p615_p12, %p614_p11 }
  0x40   :  { %523 = vmatpush3.bf16.msk.msra.mxu1 %vm522_vm10, %v645_v11  ;;  %512 = vmatprep.subr.bf16.mxu0 %v642_v1  ;;  %vm513_vm11 = vmpackc.low %vm74_vm7, %vm73_vm6  ;;  %vm106_vm4 = vcmp.eq.s32.totalorder %v64_v12, %v386_v8 }
  0x41   :  { %524 = vmatprep.subr.bf16.mxu1 %v642_v1  ;;  %vm525_vm12 = vmpackc.low %vm103_vm9, %vm102_vm8  ;;  %vm78_vm3 = vcmp.eq.s32.totalorder %v65_v13, %v377_v7  ;;  %vm107_vm10 = vcmp.eq.s32.totalorder %v65_v13, %v386_v8  ;;  %vm129_vm8 = vcmask 523264   ;;  %p617_p0 = pnand %p616_p13, %p610_p10 }
  0x42   :  { %vm516_vm1 = vmpackc.low %vm76_vm14, %vm75_vm13 }
  0x43   :  { %514 = vmatpush3.bf16.msk.msra.mxu0 %vm513_vm11, %v645_v11  ;;  %vm528_vm2 = vmpackc.low %vm105_vm0, %vm104_vm15  ;;  %vm766_vm0 = vmmov 0  }
  0x44   :  { %526 = vmatpush3.bf16.msk.msra.mxu1 %vm525_vm12, %v645_v11  ;;  %515 = vmatprep.subr.bf16.mxu0 %v642_v1  ;;  %vm519_vm6 = vmpackc.low %vm78_vm3, %vm77_vm5 }
  0x45   :  { %527 = vmatprep.subr.bf16.mxu1 %v642_v1  ;;  %vm531_vm7 = vmpackc.low %vm107_vm10, %vm106_vm4 }
  0x47   :  { %517 = vmatpush3.bf16.msk.msra.mxu0 %vm516_vm1, %v645_v11 }
  0x48   :  { %529 = vmatpush3.bf16.msk.msra.mxu1 %vm528_vm2, %v645_v11  ;;  %518 = vmatprep.subr.bf16.mxu0 %v642_v1 }
  0x49   :  { %530 = vmatprep.subr.bf16.mxu1 %v642_v1 }
  0x4b   :  { %520 = vmatpush3.bf16.msk.msra.mxu0 %vm519_vm6, %v645_v11 }
  0x4c   :  { %532 = vmatpush3.bf16.msk.msra.mxu1 %vm531_vm7, %v645_v11 }
  0x4e   :  { %464 = vmatmul.mubr.msk.f32.vlgmr.msra.gmra.mrb[0].mxu0 %vm129_vm8, %v124_v14 }
  0x4f   :  { %495 = vmatmul.mubr.msk.f32.vlgmr.msra.gmra.mrb[0].mxu1 %vm129_vm8, %v235_v15  ;;  %466 = vmatprep.mubr.msk.f32.mxu0 %vm766_vm0, %v644_v3 }
  0x50   :  { %497 = vmatprep.mubr.msk.f32.mxu1 %vm766_vm0, %v644_v3 }
  0x52   :  { %467 = vmatmul.mubr.msk.f32.gmra.mrb[2].mxu0 %vm129_vm8, %v125_v16 }
  0x53   :  { %498 = vmatmul.mubr.msk.f32.gmra.mrb[2].mxu1 %vm129_vm8, %v236_v17  ;;  %469 = vmatprep.mubr.msk.f32.mxu0 %vm766_vm0, %v644_v3 }
  0x54   :  { %500 = vmatprep.mubr.msk.f32.mxu1 %vm766_vm0, %v644_v3 }
  0x56   :  { %470 = vmatmul.mubr.msk.f32.gmra.mrb[4].mxu0 %vm129_vm8, %v126_v18 }
  0x57   :  { %501 = vmatmul.mubr.msk.f32.gmra.mrb[4].mxu1 %vm129_vm8, %v237_v19  ;;  %472 = vmatprep.mubr.msk.f32.mxu0 %vm766_vm0, %v644_v3 }
  0x58   :  { %503 = vmatprep.mubr.msk.f32.mxu1 %vm766_vm0, %v644_v3 }
  0x5a   :  { %473 = vmatmul.mubr.msk.f32.gmra.mrb[6].mxu0 %vm129_vm8, %v127_v20 }
  0x5b   :  { %504 = vmatmul.mubr.msk.f32.gmra.mrb[6].mxu1 %vm129_vm8, %v238_v21  ;;  %475 = vmatprep.mubr.msk.f32.mxu0 %vm766_vm0, %v644_v3 }
  0x5c   :  { %506 = vmatprep.mubr.msk.f32.mxu1 %vm766_vm0, %v644_v3 }
  0x5e   :  { %476 = vmatmul.mubr.msk.f32.gmra.mrb[8].mxu0 %vm129_vm8, %v128_v22 }
  0x5f   :  { %507 = vmatmul.mubr.msk.f32.gmra.mrb[8].mxu1 %vm129_vm8, %v239_v23 }
 0x121   :  { %v211_v24 = vpop.f32.mrb[0].mxu0 }
 0x122   :  { %v321_v25 = vpop.f32.mrb[0].mxu1  ;;  %v465_v26 = vpop.f32.mrb[1].mxu0 }
 0x123   :  { %v345_v27 = vmul.f32 %v321_v25, %v211_v24  ;;  %v496_v28 = vpop.f32.mrb[1].mxu1 }
 0x125   :  { %v216_v29 = vpop.f32.mrb[2].mxu0 }
 0x126   :  { %v326_v30 = vpop.f32.mrb[2].mxu1  ;;  %v468_v31 = vpop.f32.mrb[3].mxu0 }
 0x127   :  { %v346_v32 = vmul.f32 %v326_v30, %v216_v29  ;;  %v499_v33 = vpop.f32.mrb[3].mxu1 }
 0x129   :  { %v350_v34 = vadd.f32 %v346_v32, %v345_v27  ;;  %v221_v35 = vpop.f32.mrb[4].mxu0 }
 0x12a   :  { %v331_v36 = vpop.f32.mrb[4].mxu1  ;;  %v471_v37 = vpop.f32.mrb[5].mxu0 }
 0x12b   :  { %v347_v38 = vmul.f32 %v331_v36, %v221_v35  ;;  %v502_v39 = vpop.f32.mrb[5].mxu1 }
 0x12d   :  { %v351_v40 = vadd.f32 %v350_v34, %v347_v38  ;;  %v226_v41 = vpop.f32.mrb[6].mxu0 }
 0x12e   :  { %v336_v42 = vpop.f32.mrb[6].mxu1  ;;  %v474_v43 = vpop.f32.mrb[7].mxu0 }
 0x12f   :  { %v348_v44 = vmul.f32 %v336_v42, %v226_v41  ;;  %v505_v45 = vpop.f32.mrb[7].mxu1 }
 0x131   :  { %v352_v46 = vadd.f32 %v351_v40, %v348_v44  ;;  %v231_v47 = vpop.f32.mrb[8].mxu0 }
 0x132   :  { %v341_v48 = vpop.f32.mrb[8].mxu1  ;;  %v477_v49 = vpop.f32.mrb[9].mxu0 }
 0x133   :  { %v349_v50 = vmul.f32 %v341_v48, %v231_v47  ;;  %v508_v51 = vpop.f32.mrb[9].mxu1 }
 0x135   :  { %v353_v52 = vadd.f32 %v352_v46, %v349_v50 }
 0x137   :  { %v354_v53 = vrot.slane %v353_v52, 4 }
 0x139   :  { %v355_v54 = vadd.f32 %v354_v53, %v353_v52 }
 0x13b   :  { %v356_v55 = vrot.slane %v355_v54, 2 }
 0x13d   :  { %v357_v56 = vadd.f32 %v356_v55, %v355_v54 }
 0x13f   :  { %v358_v57 = vrot.slane %v357_v56, 1 }
 0x141   :  { %v359_v58 = vadd.f32 %v358_v57, %v357_v56 }
 0x143   :  { %360 = vst [vmem:[#allocation8] sm:$0x1] %v359_v58 }
 0x144   :  { %620 = shalt.err (!%p617_p0)
}
 0x145   :  { %s621_s6 = scalar_lea.hbm %s763_s4, 16 }
 0x146   :  { %p622_p1 = scmp.ne.s32.totalorder %s763_s4, %s621_s6  ;;  %p625_p2 = scmp.lt.u32.totalorder %s621_s6, %s763_s4 }
 0x148   :  { %p627_p3 = pnand %p625_p2, %p622_p1 }
 0x14a   :  { %630 = shalt.err (!%p627_p3)
}
 0x14b   :  { %370 = dma.vmem_to_hbm [thread:$0]  %s368_s26, 16, %s763_s4, [#allocation4]  }
 0x14c   :  { %635 = dma.done.wait [#allocation4], 16  }
 0x14d   :  { %636 = vsyncadd [#allocation4], 4294967280 }
 0x14e   :  { %374 = vsyncpa [#allocation3], 1 }
 0x14f   :  { %375 = vsyncpa [#allocation6], 1 }
 0x150   :  { %376 = vsyncpa [#allocation4], 1 }

</bundles_post_ra>
